<compile_context>
chip_gen: v7x
topology: tpu7x:2x2x1
jax: 0.10.0
libtpu: 0.0.40
codegen_flags: <defaults>
</compile_context>

<pallas_src>
import functools

import jax
import jax.numpy as jnp
from jax import lax
from jax.experimental import pallas as pl
from jax.experimental.pallas import tpu as pltpu


def _round_up(x, m):
    return (x + m - 1) // m * m


def _head_kernel(h_ref, wt_ref, b_ref, topv_ref, topi_ref, *, k, num_labels):
    """h_ref: (tb, H) f32/bf16; wt_ref: (L, H) bf16; b_ref: (L, 1) f32.

    Outputs: topv_ref (k, tb) f32, topi_ref (k, tb) i32 — tokens on lanes.
    Ragged last block: out-of-range token lanes hold garbage; all math below is
    per-lane (per-token), so garbage never contaminates valid lanes and the
    out-of-bounds columns are masked out of the HBM writeback by Pallas.
    """
    # In-kernel bf16 cast (no-op if already bf16) — avoids a separate wrapper
    # convert pass over hidden[T, H].
    h = h_ref[...].astype(jnp.bfloat16)

    # NT matmul on the MXU: (L, H) x (tb, H) contracting on H -> (L, tb) f32.
    # Tokens land on lanes so every post-matmul VPU/XLU op is full 128-lane.
    # (If a bundle dump ever shows a materialized transpose of the hidden
    #  block, switch to pl.dot(wt_ref[...], h, trans_b=True).)
    logits_t = lax.dot_general(
        wt_ref[...], h,
        dimension_numbers=(((1,), (1,)), ((), ())),
        preferred_element_type=jnp.float32)
    logits_t = logits_t + b_ref[...]                      # (L,1) bcast over lanes

    # Numerically stable softmax numerator; normalization deferred to winners.
    m = jnp.max(logits_t, axis=0, keepdims=True)          # (1, tb)
    e = jnp.exp(logits_t - m)                             # (L, tb) f32
    inv_s = pl.reciprocal(jnp.sum(e, axis=0, keepdims=True), approx=True)

    # Iterative top-k (k is a small static int). Ties resolve to the smallest
    # index, matching jax.lax.top_k (torch.topk leaves tie order unspecified).
    sub = lax.broadcasted_iota(jnp.int32, e.shape, dimension=0)
    vals = e
    for j in range(k):
        mx = jnp.max(vals, axis=0, keepdims=True)                      # (1, tb)
        am = jnp.min(jnp.where(vals == mx, sub, num_labels),
                     axis=0, keepdims=True)                            # (1, tb)
        # Lane-dense row writes straight into the output blocks.
        topv_ref[j:j + 1, :] = mx * inv_s
        topi_ref[j:j + 1, :] = am
        vals = jnp.where(sub == am, -1.0, vals)   # e > 0, so -1 removes winner


def _choose_token_block(T, H, token_block, hidden_itemsize):
    """Pick a 128-multiple token block <= T under a v7x-safe VMEM budget."""
    cap = (T // 128) * 128                      # largest 128-multiple <= T
    tb = min(max(128, _round_up(token_block, 128)), cap)
    # VMEM budget: double-buffered hidden blocks dominate. Keep well under the
    # v7x 32 MiB scoped default (64 MiB physical); raise vmem_limit_bytes in
    # the caller only if still needed.
    budget = 24 << 20
    while tb > 128 and 2 * tb * H * hidden_itemsize > budget:
        tb -= 128
    # Keep >= 2 grid blocks so v7x's second TensorCore has work to shard.
    if T >= 256 and pl.cdiv(T, tb) < 2:
        tb = max(128, _round_up(pl.cdiv(T, 2), 128))
    return tb


def classifier_softmax_topk(hidden, w_cls, b_cls, *, k, token_block=1024):
    """hidden: [T, H]; w_cls: [H, L]; b_cls: [L] -> ([T, k] f32, [T, k] i32)."""
    T, H = hidden.shape
    L = w_cls.shape[1]
    assert k <= L, "topk must not exceed num_labels"

    hidden_itemsize = jnp.dtype(hidden.dtype).itemsize

    T_in = T
    if T < 128:
        # Toy / short-sequence fallback: pad the token axis up to one full
        # 128-lane block (tiny; keeps output stores unmasked / lane-dense).
        hidden = jnp.pad(hidden, ((0, 128 - T), (0, 0)))
        T_in = 128
        tb = 128
    else:
        # No wrapper pad: the grid is ragged and the last partial block's
        # out-of-range lanes are ignored (masked writeback, sliced below).
        tb = _choose_token_block(T, H, token_block, hidden_itemsize)
    grid = (pl.cdiv(T_in, tb),)

    # Small resident operands (one-time relayout; negligible vs hidden stream).
    w_t = w_cls.T.astype(jnp.bfloat16)                    # (L, H)
    b_col = b_cls.reshape(L, 1).astype(jnp.float32)       # broadcasts over lanes

    # VMEM estimate: double-buffered hidden block + resident W/bias + outputs.
    vmem_need = (2 * tb * H * hidden_itemsize
                 + L * H * 2 + L * 128 * 4
                 + 2 * 2 * k * tb * 8)
    vmem_limit = None
    if vmem_need > (12 << 20):            # above v5e's 16 MiB scoped default
        vmem_limit = int(min(48 << 20, _round_up(vmem_need * 3 // 2, 1 << 20)))

    cost = pl.CostEstimate(
        flops=2 * T * H * L,
        transcendentals=T * L,
        bytes_accessed=T * H * hidden_itemsize + L * H * 2 + L * 4 + 2 * k * T * 4)

    # TODO(synk): if profiling at the chosen tb still shows exposed DMA
    # (wall >> compute), add pipeline_mode=pl.Buffered(3) on the hidden spec.
    kern = functools.partial(_head_kernel, k=k, num_labels=L)
    topv_t, topi_t = pl.pallas_call(
        kern,
        out_shape=(jax.ShapeDtypeStruct((k, T_in), jnp.float32),
                   jax.ShapeDtypeStruct((k, T_in), jnp.int32)),
        grid_spec=pltpu.PrefetchScalarGridSpec(
            num_scalar_prefetch=0,
            grid=grid,
            in_specs=[
                pl.BlockSpec((tb, H), lambda i: (i, 0)),
                pl.BlockSpec((L, H), lambda i: (0, 0)),
                pl.BlockSpec((L, 1), lambda i: (0, 0)),
            ],
            out_specs=(
                pl.BlockSpec((k, tb), lambda i: (0, i)),
                pl.BlockSpec((k, tb), lambda i: (0, i)),
            ),
        ),
        compiler_params=pltpu.CompilerParams(
            dimension_semantics=("parallel",),    # token blocks -> megacore on v7x
            vmem_limit_bytes=vmem_limit),
        cost_estimate=cost,
    )(hidden, w_t, b_col)

    # Tiny wrapper-side relayout back to tokens-major [T, k].
    topv = topv_t[:, :T].T
    topi = topi_t[:, :T].T
    return topv, topi


def model_forward(params, *, input_ids, attention_mask, topk, token_block=1024):
    """Mirrors Model.forward: backbone -> softmax -> topk -> dict outputs."""
    # TODO(synk): the pretrained BertForTokenClassification encoder has no
    # Pallas equivalent (pretrained-checkpoint load); it is replaced here by a
    # deterministic embedding lookup producing the hidden states.
    # TODO(synk): while the "backbone" is a lookup, the gather could be fused
    # into the kernel via a scalar-prefetched pl.Element row-gather BlockSpec
    # (skips one HBM round trip of hidden[T,H]); kept as XLA glue so the head
    # kernel stays backbone-agnostic. A real backbone should emit bf16 hidden
    # so the kernel's HBM read is half-width.
    B, S = input_ids.shape
    hidden = params["embed"][input_ids]                   # [B, S, H] gather (glue)
    H = hidden.shape[-1]
    hidden = hidden.reshape(B * S, H)

    topk_probs, pred_labels = classifier_softmax_topk(
        hidden, params["w_cls"], params["b_cls"], k=topk,
        token_block=token_block)

    model_outputs = {
        "pred_labels": pred_labels.reshape(B, S, topk),
        "attention_mask": attention_mask,
        # NOTE: matches the module contract; "topk_logits" are the top-k
        # softmax probabilities (the module applies softmax before topk).
        "topk_logits": topk_probs.reshape(B, S, topk),
    }
    # TODO(synk): loss (CrossEntropy when labels are given) omitted — no labels
    # are passed here, matching the `outputs.loss is None` branch.
    return model_outputs


if __name__ == "__main__":
    # Small, module-consistent shapes.
    B, S, H = 2, 16, 32          # batch, seq, hidden
    VOCAB, NUM_LABELS, TOPK = 50, 8, 3

    key = jax.random.PRNGKey(0)
    k_emb, k_w, k_b, k_ids = jax.random.split(key, 4)

    params = {
        "embed": jax.random.normal(k_emb, (VOCAB, H), jnp.float32),
        "w_cls": jax.random.normal(k_w, (H, NUM_LABELS), jnp.float32) * 0.1,
        "b_cls": jax.random.normal(k_b, (NUM_LABELS,), jnp.float32) * 0.1,
    }
    input_ids = jax.random.randint(k_ids, (B, S), 0, VOCAB, dtype=jnp.int32)
    attention_mask = jnp.ones((B, S), dtype=jnp.int32)

    out = model_forward(params, input_ids=input_ids,
                        attention_mask=attention_mask, topk=TOPK)
    jax.block_until_ready(out)

    # Reference in plain JAX with the same bf16 operand rounding as the kernel.
    hidden_ref = params["embed"][input_ids].reshape(B * S, H)
    logits_ref = (jnp.dot(hidden_ref.astype(jnp.bfloat16),
                          params["w_cls"].astype(jnp.bfloat16),
                          preferred_element_type=jnp.float32)
                  + params["b_cls"])
    probs_ref = jax.nn.softmax(logits_ref, axis=-1)
    vals_ref, idx_ref = lax.top_k(probs_ref, TOPK)

    out_vals = out["topk_logits"].reshape(B * S, TOPK)
    out_idx = out["pred_labels"].reshape(B * S, TOPK)

    # Values: loose-ish tolerance accounts for the EUP approximate reciprocal.
    assert jnp.allclose(out_vals, vals_ref, atol=1e-2, rtol=1e-2)
    # Indices: validate by gathering the reference probabilities at the kernel's
    # indices (robust to near-ties between precisions).
    gathered = jnp.take_along_axis(probs_ref, out_idx, axis=-1)
    assert jnp.allclose(gathered, vals_ref, atol=1e-2, rtol=1e-2)

    print("KERNEL_OK")
</pallas_src>

<mosaic_0001>
module attributes {stable_mosaic.version = 11 : i64} {
  func.func @_head_kernel(%arg0: i32, %arg1: memref<128x32xf32, #tpu.memory_space<vmem>>, %arg2: memref<8x32xbf16, #tpu.memory_space<vmem>>, %arg3: memref<8x1xf32, #tpu.memory_space<vmem>>, %arg4: memref<3x128xf32, #tpu.memory_space<vmem>>, %arg5: memref<3x128xi32, #tpu.memory_space<vmem>>) attributes {dimension_semantics = [#tpu.dimension_semantics<parallel>], iteration_bounds = array<i64: 1>, scalar_prefetch = 0 : i64, scratch_operands = 0 : i64, tpu.core_type = #tpu.core_type<tc>, window_params = [{transform_indices = @transform_0, window_bounds = array<i64: 128, 32>}, {pipeline_mode = #tpu.pipeline_mode<synchronous>, transform_indices = @transform_1, window_bounds = array<i64: 8, 32>}, {pipeline_mode = #tpu.pipeline_mode<synchronous>, transform_indices = @transform_2, window_bounds = array<i64: 8, 1>}, {transform_indices = @transform_3, window_bounds = array<i64: 3, 128>}, {transform_indices = @transform_4, window_bounds = array<i64: 3, 128>}]} {
    %c0 = arith.constant 0 : index
    %c0_0 = arith.constant 0 : index
    %0 = vector.load %arg1[%c0, %c0_0] : memref<128x32xf32, #tpu.memory_space<vmem>>, vector<128x32xf32>
    %1 = arith.truncf %0 : vector<128x32xf32> to vector<128x32xbf16>
    %c0_1 = arith.constant 0 : index
    %c0_2 = arith.constant 0 : index
    %2 = vector.load %arg2[%c0_1, %c0_2] : memref<8x32xbf16, #tpu.memory_space<vmem>>, vector<8x32xbf16>
    %cst = arith.constant dense<0.000000e+00> : vector<8x128xf32>
    %3 = tpu.matmul %2, %1, %cst {dimension_numbers = #tpu.dot_dimension_numbers<[1], [1], [0], [0], [0, 0, 1, 0], [], []>} : vector<8x32xbf16>, vector<128x32xbf16>, vector<8x128xf32> -> vector<8x128xf32>
    %c0_3 = arith.constant 0 : index
    %c0_4 = arith.constant 0 : index
    %4 = vector.load %arg3[%c0_3, %c0_4] : memref<8x1xf32, #tpu.memory_space<vmem>>, vector<8x1xf32>
    %5 = vector.broadcast %4 : vector<8x1xf32> to vector<8x128xf32>
    %6 = arith.addf %3, %5 : vector<8x128xf32>
    %cst_5 = arith.constant dense<0xFF800000> : vector<128xf32>
    %7 = vector.multi_reduction <maximumf>, %6, %cst_5 [0] : vector<8x128xf32> to vector<128xf32>
    %8 = vector.shape_cast %7 : vector<128xf32> to vector<1x128xf32>
    %9 = vector.broadcast %8 : vector<1x128xf32> to vector<8x128xf32>
    %10 = arith.subf %6, %9 : vector<8x128xf32>
    %11 = math.exp %10 : vector<8x128xf32>
    %cst_6 = arith.constant dense<0.000000e+00> : vector<128xf32>
    %12 = vector.multi_reduction <add>, %11, %cst_6 [0] : vector<8x128xf32> to vector<128xf32>
    %13 = vector.shape_cast %12 : vector<128xf32> to vector<1x128xf32>
    %14 = tpu.reciprocal %13 {approx = true} : vector<1x128xf32> -> vector<1x128xf32>
    %15 = tpu.iota {dimensions = array<i32: 0>} : vector<8x128xi32>
    %cst_7 = arith.constant dense<0xFF800000> : vector<128xf32>
    %16 = vector.multi_reduction <maximumf>, %11, %cst_7 [0] : vector<8x128xf32> to vector<128xf32>
    %17 = vector.shape_cast %16 : vector<128xf32> to vector<1x128xf32>
    %18 = vector.broadcast %17 : vector<1x128xf32> to vector<8x128xf32>
    %19 = arith.cmpf oeq, %11, %18 : vector<8x128xf32>
    %c8_i32 = arith.constant 8 : i32
    %20 = vector.broadcast %c8_i32 : i32 to vector<8x128xi32>
    %21 = arith.select %19, %15, %20 : vector<8x128xi1>, vector<8x128xi32>
    %cst_8 = arith.constant dense<2147483647> : vector<128xi32>
    %22 = vector.multi_reduction <minsi>, %21, %cst_8 [0] : vector<8x128xi32> to vector<128xi32>
    %23 = vector.shape_cast %22 : vector<128xi32> to vector<1x128xi32>
    %24 = arith.mulf %17, %14 : vector<1x128xf32>
    %c0_9 = arith.constant 0 : index
    %c0_10 = arith.constant 0 : index
    %25 = vector.load %arg4[%c0_9, %c0_10] : memref<3x128xf32, #tpu.memory_space<vmem>>, vector<1x128xf32>
    tpu.vector_store %arg4[%c0_9, %c0_10], %24 {strides = array<i32>} : memref<3x128xf32, #tpu.memory_space<vmem>>, vector<1x128xf32>,
    %c0_11 = arith.constant 0 : index
    %c0_12 = arith.constant 0 : index
    %26 = vector.load %arg5[%c0_11, %c0_12] : memref<3x128xi32, #tpu.memory_space<vmem>>, vector<1x128xi32>
    tpu.vector_store %arg5[%c0_11, %c0_12], %23 {strides = array<i32>} : memref<3x128xi32, #tpu.memory_space<vmem>>, vector<1x128xi32>,
    %27 = vector.broadcast %23 : vector<1x128xi32> to vector<8x128xi32>
    %28 = arith.cmpi eq, %15, %27 : vector<8x128xi32>
    %cst_13 = arith.constant -1.000000e+00 : f32
    %29 = vector.broadcast %cst_13 : f32 to vector<8x128xf32>
    %30 = arith.select %28, %29, %11 : vector<8x128xi1>, vector<8x128xf32>
    %cst_14 = arith.constant dense<0xFF800000> : vector<128xf32>
    %31 = vector.multi_reduction <maximumf>, %30, %cst_14 [0] : vector<8x128xf32> to vector<128xf32>
    %32 = vector.shape_cast %31 : vector<128xf32> to vector<1x128xf32>
    %33 = vector.broadcast %32 : vector<1x128xf32> to vector<8x128xf32>
    %34 = arith.cmpf oeq, %30, %33 : vector<8x128xf32>
    %c8_i32_15 = arith.constant 8 : i32
    %35 = vector.broadcast %c8_i32_15 : i32 to vector<8x128xi32>
    %36 = arith.select %34, %15, %35 : vector<8x128xi1>, vector<8x128xi32>
    %cst_16 = arith.constant dense<2147483647> : vector<128xi32>
    %37 = vector.multi_reduction <minsi>, %36, %cst_16 [0] : vector<8x128xi32> to vector<128xi32>
    %38 = vector.shape_cast %37 : vector<128xi32> to vector<1x128xi32>
    %39 = arith.mulf %32, %14 : vector<1x128xf32>
    %c1 = arith.constant 1 : index
    %c0_17 = arith.constant 0 : index
    %40 = vector.load %arg4[%c1, %c0_17] : memref<3x128xf32, #tpu.memory_space<vmem>>, vector<1x128xf32>
    tpu.vector_store %arg4[%c1, %c0_17], %39 {strides = array<i32>} : memref<3x128xf32, #tpu.memory_space<vmem>>, vector<1x128xf32>,
    %c1_18 = arith.constant 1 : index
    %c0_19 = arith.constant 0 : index
    %41 = vector.load %arg5[%c1_18, %c0_19] : memref<3x128xi32, #tpu.memory_space<vmem>>, vector<1x128xi32>
    tpu.vector_store %arg5[%c1_18, %c0_19], %38 {strides = array<i32>} : memref<3x128xi32, #tpu.memory_space<vmem>>, vector<1x128xi32>,
    %42 = vector.broadcast %38 : vector<1x128xi32> to vector<8x128xi32>
    %43 = arith.cmpi eq, %15, %42 : vector<8x128xi32>
    %cst_20 = arith.constant -1.000000e+00 : f32
    %44 = vector.broadcast %cst_20 : f32 to vector<8x128xf32>
    %45 = arith.select %43, %44, %30 : vector<8x128xi1>, vector<8x128xf32>
    %cst_21 = arith.constant dense<0xFF800000> : vector<128xf32>
    %46 = vector.multi_reduction <maximumf>, %45, %cst_21 [0] : vector<8x128xf32> to vector<128xf32>
    %47 = vector.shape_cast %46 : vector<128xf32> to vector<1x128xf32>
    %48 = vector.broadcast %47 : vector<1x128xf32> to vector<8x128xf32>
    %49 = arith.cmpf oeq, %45, %48 : vector<8x128xf32>
    %c8_i32_22 = arith.constant 8 : i32
    %50 = vector.broadcast %c8_i32_22 : i32 to vector<8x128xi32>
    %51 = arith.select %49, %15, %50 : vector<8x128xi1>, vector<8x128xi32>
    %cst_23 = arith.constant dense<2147483647> : vector<128xi32>
    %52 = vector.multi_reduction <minsi>, %51, %cst_23 [0] : vector<8x128xi32> to vector<128xi32>
    %53 = vector.shape_cast %52 : vector<128xi32> to vector<1x128xi32>
    %54 = arith.mulf %47, %14 : vector<1x128xf32>
    %c2 = arith.constant 2 : index
    %c0_24 = arith.constant 0 : index
    %55 = vector.load %arg4[%c2, %c0_24] : memref<3x128xf32, #tpu.memory_space<vmem>>, vector<1x128xf32>
    tpu.vector_store %arg4[%c2, %c0_24], %54 {strides = array<i32>} : memref<3x128xf32, #tpu.memory_space<vmem>>, vector<1x128xf32>,
    %c2_25 = arith.constant 2 : index
    %c0_26 = arith.constant 0 : index
    %56 = vector.load %arg5[%c2_25, %c0_26] : memref<3x128xi32, #tpu.memory_space<vmem>>, vector<1x128xi32>
    tpu.vector_store %arg5[%c2_25, %c0_26], %53 {strides = array<i32>} : memref<3x128xi32, #tpu.memory_space<vmem>>, vector<1x128xi32>,
    return
  }
  func.func @transform_0(%arg0: i32) -> (i32, i32) {
    %c0_i32 = arith.constant 0 : i32
    %c0_i32_0 = arith.constant 0 : i32
    return %arg0, %c0_i32 : i32, i32
  }
  func.func @transform_1(%arg0: i32) -> (i32, i32) {
    %c0_i32 = arith.constant 0 : i32
    %c0_i32_0 = arith.constant 0 : i32
    %c0_i32_1 = arith.constant 0 : i32
    return %c0_i32, %c0_i32_0 : i32, i32
  }
  func.func @transform_2(%arg0: i32) -> (i32, i32) {
    %c0_i32 = arith.constant 0 : i32
    %c0_i32_0 = arith.constant 0 : i32
    %c0_i32_1 = arith.constant 0 : i32
    return %c0_i32, %c0_i32_0 : i32, i32
  }
  func.func @transform_3(%arg0: i32) -> (i32, i32) {
    %c0_i32 = arith.constant 0 : i32
    %c0_i32_0 = arith.constant 0 : i32
    return %c0_i32, %arg0 : i32, i32
  }
  func.func @transform_4(%arg0: i32) -> (i32, i32) {
    %c0_i32 = arith.constant 0 : i32
    %c0_i32_0 = arith.constant 0 : i32
    return %c0_i32, %arg0 : i32, i32
  }
}

</mosaic_0001>

<bundles_post_ra>
// kernel: tpu_custom_call.1
= control target key start
LH: loop header
LB: loop body
LE: loop exit
PB: predicated region body
PF: predicated region fallthrough
CT: control target
= control target key end

     0   :  { %10 = vsyncpa [#allocation3], 0  ;;  %vm50_vm0 = vcmask 261120   ;;  %v316_v2 = vmov 0.0   ;;  %vm317_vm1 = vmmov 0   ;;  %v318_v6 = vmov 0   ;;  %s433_s0 = inlined_call_operand.vmem [shape: f32[128,32], index: 0, kind: input, shape index: {}]   ;;  %s434_s1 = inlined_call_operand.vmem [shape: bf16[8,32], index: 1, kind: input, shape index: {}]   ;;  %s435_s2 = inlined_call_operand.vmem [shape: f32[8,1], index: 2, kind: input, shape index: {}]   ;;  %s436_s3 = inlined_call_operand.hbm [shape: f32[3,128], index: 3, kind: output, shape index: {0}]   ;;  %s437_s4 = inlined_call_operand.hbm [shape: s32[3,128], index: 4, kind: output, shape index: {1}]  }
   0x1   :  { %v19_v0 = vld [vmem:[%s433_s0] sm:$0xff]  ;;  %v20_v1 = vld [vmem:[%s433_s0 + $0x8] sm:$0xff]  ;;  %238 = vmatprep.subr.bf16.mxu0 %v316_v2  ;;  %254 = vmatprep.mubr.msk.bf16.mxu0 %vm317_vm1, %v316_v2  ;;  %v21_v4 = vld [vmem:[%s433_s0 + $0x10] sm:$0xff] }
   0x2   :  { %v35_v3 = vpack.c.bf16 %v20_v1, %v19_v0  ;;  %v22_v5 = vld [vmem:[%s433_s0 + $0x18] sm:$0xff]  ;;  %263 = vset.pattern.permute.xlu0 %v318_v6  ;;  %v44_v9 = vld [vmem:[%s435_s2] sm:$0xff] }
   0x3   :  { %v36_v8 = vpack.c.bf16 %v22_v5, %v21_v4  ;;  %47 = vperm.xlu0 %263, %v44_v9  }
   0x4   :  { %v55_v7 = vsel %vm50_vm0, %v35_v3, 0 }
   0x5   :  { %239 = vmatpush3.bf16.xpose.msra.mxu0 %v55_v7 }
   0x6   :  { %240 = vmatprep.subr.bf16.mxu0 %v316_v2 }
   0x7   :  { %11 = vsyncpa [#allocation5], 0  ;;  %v58_v10 = vsel %vm50_vm0, %v36_v8, 0  ;;  %v23_v11 = vld [vmem:[%s433_s0 + $0x20] sm:$0xff]  ;;  %v24_v12 = vld [vmem:[%s433_s0 + $0x28] sm:$0xff]  ;;  %v134_v56 = vlaneseq }
   0x8   :  { %v37_v13 = vpack.c.bf16 %v24_v12, %v23_v11  ;;  %v25_v15 = vld [vmem:[%s433_s0 + $0x30] sm:$0xff]  ;;  %v26_v16 = vld [vmem:[%s433_s0 + $0x38] sm:$0xff]  ;;  %v27_v19 = vld [vmem:[%s433_s0 + $0x40] sm:$0xff] }
   0x9   :  { %v38_v17 = vpack.c.bf16 %v26_v16, %v25_v15  ;;  %v28_v20 = vld [vmem:[%s433_s0 + $0x48] sm:$0xff]  ;;  %v29_v23 = vld [vmem:[%s433_s0 + $0x50] sm:$0xff]  ;;  %v30_v24 = vld [vmem:[%s433_s0 + $0x58] sm:$0xff]  ;;  %v135_v61 = vshrl.u32 %v134_v56, 7 }
   0xa   :  { %v61_v14 = vsel %vm50_vm0, %v37_v13, 0  ;;  %v39_v21 = vpack.c.bf16 %v28_v20, %v27_v19  ;;  %v40_v25 = vpack.c.bf16 %v30_v24, %v29_v23  ;;  %v31_v27 = vld [vmem:[%s433_s0 + $0x60] sm:$0xff]  ;;  %v32_v28 = vld [vmem:[%s433_s0 + $0x68] sm:$0xff]  ;;  %v33_v31 = vld [vmem:[%s433_s0 + $0x70] sm:$0xff] }
   0xb   :  { %v64_v18 = vsel %vm50_vm0, %v38_v17, 0  ;;  %v41_v29 = vpack.c.bf16 %v32_v28, %v31_v27  ;;  %v34_v32 = vld [vmem:[%s433_s0 + $0x78] sm:$0xff]  ;;  %v43_v35 = vld [vmem:[%s434_s1] sm:$0xf]  ;;  %s319_s0 = smov [#allocation2]  }
   0xc   :  { %v67_v22 = vsel %vm50_vm0, %v39_v21, 0  ;;  %v70_v26 = vsel %vm50_vm0, %v40_v25, 0  ;;  %v42_v33 = vpack.c.bf16 %v34_v32, %v33_v31  ;;  %s206_s1 = sshll.u32 %s319_s0, 4  ;;  %s207_s1 = int_to_ptr.vmem [resolvable:$true] %s206_s1 }
   0xd   :  { %241 = vmatpush3.bf16.xpose.msra.mxu0 %v58_v10  ;;  %v73_v30 = vsel %vm50_vm0, %v41_v29, 0  ;;  %s268_s24 = scalar_lea.vmem %s207_s1, 64  ;;  %p273_p1 = scmp.lt.s32.totalorder %s207_s1, %s207_s1 }
   0xe   :  { %242 = vmatprep.subr.bf16.mxu0 %v316_v2  ;;  %v76_v34 = vsel %vm50_vm0, %v42_v33, 0  ;;  %p269_p0 = scmp.ne.s32.totalorder %s207_s1, %s268_s24  ;;  %p274_p2 = scmp.lt.s32.totalorder %s268_s24, %s268_s24 }
  0x10   :  { %p275_p3 = por %p274_p2, %p273_p1 }
  0x12   :  { %p276_p4 = pnand %p275_p3, %p269_p0 }
  0x15   :  { %243 = vmatpush3.bf16.xpose.msra.mxu0 %v61_v14 }
  0x16   :  { %244 = vmatprep.subr.bf16.mxu0 %v316_v2 }
  0x1d   :  { %245 = vmatpush3.bf16.xpose.msra.mxu0 %v64_v18 }
  0x1e   :  { %246 = vmatprep.subr.bf16.mxu0 %v316_v2 }
  0x25   :  { %247 = vmatpush3.bf16.xpose.msra.mxu0 %v67_v22 }
  0x26   :  { %248 = vmatprep.subr.bf16.mxu0 %v316_v2 }
  0x2d   :  { %249 = vmatpush3.bf16.xpose.msra.mxu0 %v70_v26 }
  0x2e   :  { %250 = vmatprep.subr.bf16.mxu0 %v316_v2 }
  0x35   :  { %251 = vmatpush3.bf16.xpose.msra.mxu0 %v73_v30 }
  0x36   :  { %252 = vmatprep.subr.bf16.mxu0 %v316_v2 }
  0x3d   :  { %253 = vmatpush3.bf16.xpose.msra.mxu0 %v76_v34 }
  0x44   :  { %255 = vmatmul.mubr.msk.bf16.vlgmr.msra.gmra.mrb[0].mxu0 %vm50_vm0, %v43_v35 }
  0x82   :  { %v48_v36 = vpop.permute.xlu0 %47 }
 0x117   :  { %v112_v37 = vpop.f32.mrb[0].mxu0 }
 0x118   :  { %v113_v38 = vadd.f32 %v112_v37, %v48_v36  ;;  %v256_v39 = vpop.f32.mrb[1].mxu0 }
 0x119   :  { %v115_v40 = vpop.f32.mrb[2].mxu0 }
 0x11a   :  { %v118_v41 = vrot.slane %v113_v38, 4  ;;  %v257_v42 = vpop.f32.mrb[3].mxu0 }
 0x11c   :  { %v119_v43 = vmax.f32 %v113_v38, %v118_v41 }
 0x11e   :  { %v120_v44 = vrot.slane %v119_v43, 2 }
 0x120   :  { %v121_v45 = vmax.f32 %v119_v43, %v120_v44 }
 0x122   :  { %v122_v46 = vrot.slane %v121_v45, 1 }
 0x124   :  { %v123_v47 = vmax.f32 %v121_v45, %v122_v46 }
 0x126   :  { %v124_v48 = vsub.f32 %v113_v38, %v123_v47 }
 0x128   :  { %v125_v49 = vmul.f32 1.442695, %v124_v48 }
 0x12a   :  { %264 = vpow2.f32 %v125_v49 }
 0x134   :  { %v265_v50 = vpop.eup %264 }
 0x135   :  { %v127_v51 = vrot.slane %v265_v50, 4 }
 0x137   :  { %v128_v52 = vadd.f32 %v265_v50, %v127_v51  ;;  %v137_v53 = vmax.f32 %v265_v50, %v127_v51 }
 0x139   :  { %v129_v54 = vrot.slane %v128_v52, 2  ;;  %v138_v55 = vrot.slane %v137_v53, 2 }
 0x13b   :  { %v130_v57 = vadd.f32 %v129_v54, %v128_v52  ;;  %v139_v58 = vmax.f32 %v137_v53, %v138_v55 }
 0x13d   :  { %v131_v59 = vrot.slane %v130_v57, 1  ;;  %v140_v60 = vrot.slane %v139_v58, 1 }
 0x13f   :  { %v132_v62 = vadd.f32 %v131_v59, %v130_v57  ;;  %v141_v63 = vmax.f32 %v139_v58, %v140_v60 }
 0x141   :  { %266 = vrcp.f32 %v132_v62  ;;  %vm142_vm2 = vcmp.eq.f32.partialorder %v265_v50, %v141_v63 }
 0x142   :  { %v143_v0 = vsel %vm142_vm2, %v135_v61, 8 }
 0x143   :  { %v144_v1 = vrot.slane %v143_v0, 4 }
 0x145   :  { %vm145_vm3 = vcmp.lt.s32.totalorder %v143_v0, %v144_v1 }
 0x146   :  { %v146_v2 = vsel %vm145_vm3, %v143_v0, %v144_v1 }
 0x147   :  { %v147_v3 = vrot.slane %v146_v2, 2 }
 0x149   :  { %vm148_vm4 = vcmp.lt.s32.totalorder %v146_v2, %v147_v3 }
 0x14a   :  { %v149_v4 = vsel %vm148_vm4, %v146_v2, %v147_v3 }
 0x14b   :  { %v267_v5 = vpop.eup %266  ;;  %v150_v6 = vrot.slane %v149_v4, 1 }
 0x14c   :  { %v153_v7 = vmul.f32 %v267_v5, %v141_v63 }
 0x14d   :  { %vm151_vm5 = vcmp.lt.s32.totalorder %v149_v4, %v150_v6 }
 0x14e   :  { %v152_v8 = vsel %vm151_vm5, %v149_v4, %v150_v6  ;;  %154 = vst [vmem:[#allocation2] sm:$0x1] %v153_v7 }
 0x14f   :  { %vm156_vm6 = vcmp.eq.s32.totalorder %v135_v61, %v152_v8  ;;  %155 = vst [vmem:[#allocation4] sm:$0x1] %v152_v8 }
 0x150   :  { %v157_v9 = vsel %vm156_vm6, -1.0, %v265_v50 }
 0x151   :  { %v158_v10 = vrot.slane %v157_v9, 4 }
 0x153   :  { %v159_v11 = vmax.f32 %v157_v9, %v158_v10 }
 0x155   :  { %v160_v12 = vrot.slane %v159_v11, 2 }
 0x157   :  { %v161_v13 = vmax.f32 %v159_v11, %v160_v12 }
 0x159   :  { %v162_v14 = vrot.slane %v161_v13, 1 }
 0x15b   :  { %v163_v15 = vmax.f32 %v161_v13, %v162_v14 }
 0x15d   :  { %vm164_vm7 = vcmp.eq.f32.partialorder %v157_v9, %v163_v15  ;;  %v175_v16 = vmul.f32 %v267_v5, %v163_v15 }
 0x15e   :  { %v165_v17 = vsel %vm164_vm7, %v135_v61, 8 }
 0x15f   :  { %v166_v18 = vrot.slane %v165_v17, 4  ;;  %176 = vst [vmem:[#allocation2 + $0x1] sm:$0x1] %v175_v16 }
 0x161   :  { %vm167_vm8 = vcmp.lt.s32.totalorder %v165_v17, %v166_v18 }
 0x162   :  { %v168_v19 = vsel %vm167_vm8, %v165_v17, %v166_v18 }
 0x163   :  { %v169_v20 = vrot.slane %v168_v19, 2 }
 0x165   :  { %vm170_vm9 = vcmp.lt.s32.totalorder %v168_v19, %v169_v20 }
 0x166   :  { %v171_v21 = vsel %vm170_vm9, %v168_v19, %v169_v20 }
 0x167   :  { %v172_v22 = vrot.slane %v171_v21, 1 }
 0x169   :  { %vm173_vm10 = vcmp.lt.s32.totalorder %v171_v21, %v172_v22 }
 0x16a   :  { %v174_v23 = vsel %vm173_vm10, %v171_v21, %v172_v22 }
 0x16b   :  { %vm178_vm11 = vcmp.eq.s32.totalorder %v135_v61, %v174_v23  ;;  %177 = vst [vmem:[#allocation4 + $0x1] sm:$0x1] %v174_v23 }
 0x16c   :  { %v179_v24 = vsel %vm178_vm11, -1.0, %v157_v9 }
 0x16d   :  { %v180_v25 = vrot.slane %v179_v24, 4 }
 0x16f   :  { %v181_v26 = vmax.f32 %v179_v24, %v180_v25 }
 0x171   :  { %v182_v27 = vrot.slane %v181_v26, 2 }
 0x173   :  { %v183_v28 = vmax.f32 %v181_v26, %v182_v27 }
 0x175   :  { %v184_v29 = vrot.slane %v183_v28, 1 }
 0x177   :  { %v185_v30 = vmax.f32 %v183_v28, %v184_v29 }
 0x179   :  { %vm186_vm12 = vcmp.eq.f32.partialorder %v179_v24, %v185_v30  ;;  %v197_v31 = vmul.f32 %v267_v5, %v185_v30 }
 0x17a   :  { %v187_v32 = vsel %vm186_vm12, %v135_v61, 8 }
 0x17b   :  { %v188_v33 = vrot.slane %v187_v32, 4  ;;  %198 = vst [vmem:[#allocation2 + $0x2] sm:$0x1] %v197_v31 }
 0x17c   :  { %279 = shalt.err (!%p276_p4)
}
 0x17d   :  { %s280_s27 = scalar_lea.hbm %s436_s3, 64 }
 0x17e   :  { %p281_p5 = scmp.ne.s32.totalorder %s436_s3, %s280_s27  ;;  %p284_p6 = scmp.lt.u32.totalorder %s280_s27, %s436_s3 }
 0x180   :  { %p286_p7 = pnand %p284_p6, %p281_p5 }
 0x182   :  { %289 = shalt.err (!%p286_p7)
}
 0x183   :  { %209 = dma.vmem_to_hbm [thread:$0]  %s207_s1, 64, %s436_s3, [#allocation3]   ;;  %vm189_vm13 = vcmp.lt.s32.totalorder %v187_v32, %v188_v33 }
 0x184   :  { %v190_v34 = vsel %vm189_vm13, %v187_v32, %v188_v33  ;;  %s320_s7 = smov [#allocation4]  }
 0x185   :  { %v191_v35 = vrot.slane %v190_v34, 2  ;;  %s216_s8 = sshll.u32 %s320_s7, 4  ;;  %s217_s8 = int_to_ptr.vmem [resolvable:$true] %s216_s8 }
 0x186   :  { %s290_s9 = scalar_lea.vmem %s217_s8, 64  ;;  %p295_p9 = scmp.lt.s32.totalorder %s217_s8, %s217_s8 }
 0x187   :  { %vm192_vm14 = vcmp.lt.s32.totalorder %v190_v34, %v191_v35  ;;  %p291_p8 = scmp.ne.s32.totalorder %s217_s8, %s290_s9  ;;  %p296_p10 = scmp.lt.s32.totalorder %s290_s9, %s290_s9 }
 0x188   :  { %v193_v36 = vsel %vm192_vm14, %v190_v34, %v191_v35 }
 0x189   :  { %v194_v37 = vrot.slane %v193_v36, 1  ;;  %p297_p11 = por %p296_p10, %p295_p9 }
 0x18b   :  { %vm195_vm15 = vcmp.lt.s32.totalorder %v193_v36, %v194_v37  ;;  %p298_p12 = pnand %p297_p11, %p291_p8 }
 0x18c   :  { %v196_v38 = vsel %vm195_vm15, %v193_v36, %v194_v37 }
 0x18d   :  { %199 = vst [vmem:[#allocation4 + $0x2] sm:$0x1] %v196_v38 }
 0x18e   :  { %301 = shalt.err (!%p298_p12)
}
 0x18f   :  { %s302_s11 = scalar_lea.hbm %s437_s4, 64 }
 0x190   :  { %p303_p13 = scmp.ne.s32.totalorder %s437_s4, %s302_s11  ;;  %p306_p0 = scmp.lt.u32.totalorder %s302_s11, %s437_s4 }
 0x192   :  { %p308_p1 = pnand %p306_p0, %p303_p13 }
 0x194   :  { %311 = shalt.err (!%p308_p1)
}
 0x195   :  { %219 = dma.vmem_to_hbm [thread:$0]  %s217_s8, 64, %s437_s4, [#allocation5]  }
 0x196   :  { %312 = dma.done.wait [#allocation3], 64  }
 0x197   :  { %313 = vsyncadd [#allocation3], 4294967232 }
 0x198   :  { %314 = dma.done.wait [#allocation5], 64  }
 0x199   :  { %315 = vsyncadd [#allocation5], 4294967232 }
 0x19a   :  { %226 = vsyncpa [#allocation3], 1 }
 0x19b   :  { %227 = vsyncpa [#allocation5], 1 }

</bundles_post_ra>
